<compile_context>
chip_gen: v7x
topology: tpu7x:2x2x1
jax: 0.10.0
libtpu: 0.0.40
codegen_flags: <defaults>
</compile_context>

<pallas_src>
import functools
import math

import jax
import jax.numpy as jnp
from jax.experimental import pallas as pl
from jax.experimental.pallas import tpu as pltpu


def final_layer_kernel(x_ref, c_ref, wada_ref, bada_ref, wlin_ref, blin_ref,
                       o_ref, *, eps):
    Bblk, T, H = x_ref.shape

    x = x_ref[...].astype(jnp.float32)          # (Bblk, T, H)
    c = c_ref[0].astype(jnp.float32)            # (Bblk, H)

    # ---- adaLN_modulation: Linear(SiLU(c)) -> (Bblk, 2H), chunk into shift/scale
    silu_c = c * jax.lax.logistic(c)                                     # SiLU = c * sigmoid(c)
    mod = jnp.dot(silu_c.astype(wada_ref.dtype), wada_ref[...],
                  preferred_element_type=jnp.float32) + bada_ref[...]    # (Bblk, 2H) f32
    shift = mod[:, :H]                                                   # (Bblk, H)
    scale = mod[:, H:]                                                   # (Bblk, H)

    # ---- LayerNorm over the last dim (elementwise_affine=False), f32 stats
    mu = jnp.mean(x, axis=-1, keepdims=True)                             # (Bblk, T, 1)
    xc = x - mu
    var = jnp.mean(xc * xc, axis=-1, keepdims=True)                      # (Bblk, T, 1)
    xn = xc * jax.lax.rsqrt(var + eps)                                   # (Bblk, T, H)

    # ---- modulate (broadcast per-batch shift/scale over the token axis)
    y = xn * (1.0 + scale[:, None, :]) + shift[:, None, :]               # (Bblk, T, H)

    # ---- final Linear: flatten batch*tokens so MXU M is Bblk*T rows
    y2 = y.reshape(Bblk * T, H).astype(wlin_ref.dtype)                   # (Bblk*T, H) bf16
    out = jnp.dot(y2, wlin_ref[...],
                  preferred_element_type=jnp.float32) + blin_ref[...]    # (Bblk*T, D_out) f32
    o_ref[...] = out.reshape(Bblk, T, -1).astype(o_ref.dtype)


def final_layer_forward(x, c, params, *, eps=1e-6, num_steps=None):
    B, T, H = x.shape
    D_out = params["w_lin_t"].shape[1]

    # Keep a 2-way parallel grid (one shard per TensorCore on v7x); on 1-TC
    # chips the extra step costs ~0.35 us and keeps the x tile VMEM-friendly.
    if num_steps is None:
        num_steps = 2 if B % 2 == 0 else 1
    assert B % num_steps == 0
    Bblk = B // num_steps

    # (num_steps, Bblk, H) view of c so its block keeps a clean (Bblk, H) tail.
    c3 = c.reshape(num_steps, Bblk, H)

    kern = functools.partial(final_layer_kernel, eps=eps)
    return pl.pallas_call(
        kern,
        out_shape=jax.ShapeDtypeStruct((B, T, D_out), x.dtype),
        grid=(num_steps,),
        in_specs=[
            # per-step tiles
            pl.BlockSpec((Bblk, T, H), lambda s: (s, 0, 0)),             # x
            pl.BlockSpec((1, Bblk, H), lambda s: (s, 0, 0)),             # c
            # constant weights/biases: single-buffered (never change per step)
            pl.BlockSpec((H, 2 * H), lambda s: (0, 0),
                         pipeline_mode=pl.Buffered(1)),                  # adaLN weight (H, 2H) bf16
            pl.BlockSpec((1, 2 * H), lambda s: (0, 0),
                         pipeline_mode=pl.Buffered(1)),                  # adaLN bias f32
            pl.BlockSpec((H, D_out), lambda s: (0, 0),
                         pipeline_mode=pl.Buffered(1)),                  # final weight (H, D_out) bf16
            pl.BlockSpec((1, D_out), lambda s: (0, 0),
                         pipeline_mode=pl.Buffered(1)),                  # final bias f32
        ],
        out_specs=pl.BlockSpec((Bblk, T, D_out), lambda s: (s, 0, 0)),
        compiler_params=pltpu.CompilerParams(
            dimension_semantics=("parallel",),
            vmem_limit_bytes=32 * 1024 * 1024),
    )(x, c3, params["w_ada_t"], params["b_ada_2d"],
      params["w_lin_t"], params["b_lin_2d"])


def final_layer_reference(x, c, P, *, eps=1e-6):
    # pure-JAX f32 mirror of the PyTorch forward (torch Linear: y = x @ W.T + b)
    hp = jax.lax.Precision.HIGHEST
    H = x.shape[-1]
    silu_c = c * jax.nn.sigmoid(c)
    mod = jnp.einsum("bh,oh->bo", silu_c, P["w_ada"], precision=hp) + P["b_ada"]
    shift, scale = mod[:, :H], mod[:, H:]
    mu = jnp.mean(x, axis=-1, keepdims=True)
    var = jnp.mean((x - mu) ** 2, axis=-1, keepdims=True)
    xn = (x - mu) / jnp.sqrt(var + eps)
    y = xn * (1.0 + scale[:, None, :]) + shift[:, None, :]
    return jnp.einsum("bth,oh->bto", y, P["w_lin"], precision=hp) + P["b_lin"]


if __name__ == "__main__":
    # FinalLayer(hidden_size=128, patch_h=4, patch_w=4, out_channels=8)
    B, T = 4, 64                               # 2 grid steps x (Bblk*T = 128 MXU rows)
    hidden = 128
    patch_h, patch_w, out_ch = 4, 4, 8
    D_out = patch_h * patch_w * out_ch         # 128 -> lane-dense output

    key = jax.random.PRNGKey(0)
    ks = jax.random.split(key, 6)
    x = jax.random.normal(ks[0], (B, T, hidden), jnp.float32)
    c = jax.random.normal(ks[1], (B, hidden), jnp.float32)

    # parameters in torch layout (f32 master copies)
    P = {
        "w_ada": jax.random.normal(ks[2], (2 * hidden, hidden), jnp.float32) / math.sqrt(hidden),
        "b_ada": jax.random.normal(ks[3], (2 * hidden,), jnp.float32) * 0.1,
        "w_lin": jax.random.normal(ks[4], (D_out, hidden), jnp.float32) / math.sqrt(hidden),
        "b_lin": jax.random.normal(ks[5], (D_out,), jnp.float32) * 0.1,
    }

    # kernel-side layout: pre-transposed bf16 weights, f32 biases as (1, N) rows
    kernel_params = {
        "w_ada_t": P["w_ada"].T.astype(jnp.bfloat16),   # (H, 2H)
        "b_ada_2d": P["b_ada"].reshape(1, -1),          # (1, 2H) f32
        "w_lin_t": P["w_lin"].T.astype(jnp.bfloat16),   # (H, D_out)
        "b_lin_2d": P["b_lin"].reshape(1, -1),          # (1, D_out) f32
    }

    out = final_layer_forward(x, c, kernel_params)
    out = jax.block_until_ready(out)

    ref = final_layer_reference(x, c, P)
    assert out.shape == (B, T, D_out)
    max_err = float(jnp.max(jnp.abs(out - ref)))
    # bf16 MXU operands vs f32 reference -> loosened tolerance; still catches
    # any structural/broadcast/normalization bug (those produce O(1) errors).
    if not bool(jnp.allclose(out, ref, atol=5e-2, rtol=5e-2)):
        raise AssertionError(f"Pallas FinalLayer output mismatch, max abs err = {max_err}")
    print("KERNEL_OK")
</pallas_src>

<mosaic_0001>
module attributes {stable_mosaic.version = 11 : i64} {
  func.func @final_layer_kernel(%arg0: i32, %arg1: memref<2x64x128xf32, #tpu.memory_space<vmem>>, %arg2: memref<1x2x128xf32, #tpu.memory_space<vmem>>, %arg3: memref<128x256xbf16, #tpu.memory_space<vmem>>, %arg4: memref<1x256xf32, #tpu.memory_space<vmem>>, %arg5: memref<128x128xbf16, #tpu.memory_space<vmem>>, %arg6: memref<1x128xf32, #tpu.memory_space<vmem>>, %arg7: memref<2x64x128xf32, #tpu.memory_space<vmem>>) attributes {dimension_semantics = [#tpu.dimension_semantics<parallel>], iteration_bounds = array<i64: 2>, scalar_prefetch = 0 : i64, scratch_operands = 0 : i64, tpu.core_type = #tpu.core_type<tc>, window_params = [{transform_indices = @transform_0, window_bounds = array<i64: 2, 64, 128>}, {transform_indices = @transform_1, window_bounds = array<i64: 1, 2, 128>}, {pipeline_mode = #tpu.pipeline_mode<synchronous>, transform_indices = @transform_2, window_bounds = array<i64: 128, 256>}, {pipeline_mode = #tpu.pipeline_mode<synchronous>, transform_indices = @transform_3, window_bounds = array<i64: 1, 256>}, {pipeline_mode = #tpu.pipeline_mode<synchronous>, transform_indices = @transform_4, window_bounds = array<i64: 128, 128>}, {pipeline_mode = #tpu.pipeline_mode<synchronous>, transform_indices = @transform_5, window_bounds = array<i64: 1, 128>}, {transform_indices = @transform_6, window_bounds = array<i64: 2, 64, 128>}]} {
    %c0 = arith.constant 0 : index
    %c0_0 = arith.constant 0 : index
    %c0_1 = arith.constant 0 : index
    %0 = vector.load %arg1[%c0, %c0_0, %c0_1] : memref<2x64x128xf32, #tpu.memory_space<vmem>>, vector<2x64x128xf32>
    %c0_2 = arith.constant 0 : index
    %c0_3 = arith.constant 0 : index
    %c0_4 = arith.constant 0 : index
    %1 = vector.load %arg2[%c0_2, %c0_3, %c0_4] : memref<1x2x128xf32, #tpu.memory_space<vmem>>, vector<1x2x128xf32>
    %2 = vector.shape_cast %1 : vector<1x2x128xf32> to vector<2x128xf32>
    %3 = arith.negf %2 : vector<2x128xf32>
    %4 = math.exp %3 : vector<2x128xf32>
    %cst = arith.constant 1.000000e+00 : f32
    %5 = vector.broadcast %cst : f32 to vector<2x128xf32>
    %6 = arith.addf %5, %4 : vector<2x128xf32>
    %7 = arith.divf %5, %6 : vector<2x128xf32>
    %8 = arith.mulf %2, %7 : vector<2x128xf32>
    %9 = arith.truncf %8 : vector<2x128xf32> to vector<2x128xbf16>
    %c0_5 = arith.constant 0 : index
    %c0_6 = arith.constant 0 : index
    %10 = vector.load %arg3[%c0_5, %c0_6] : memref<128x256xbf16, #tpu.memory_space<vmem>>, vector<128x256xbf16>
    %cst_7 = arith.constant dense<0.000000e+00> : vector<2x256xf32>
    %11 = tpu.matmul %9, %10, %cst_7 {dimension_numbers = #tpu.dot_dimension_numbers<[1], [0], [0], [1], [0, 0, 1, 1], [], []>} : vector<2x128xbf16>, vector<128x256xbf16>, vector<2x256xf32> -> vector<2x256xf32>
    %c0_8 = arith.constant 0 : index
    %c0_9 = arith.constant 0 : index
    %12 = vector.load %arg4[%c0_8, %c0_9] : memref<1x256xf32, #tpu.memory_space<vmem>>, vector<1x256xf32>
    %13 = vector.broadcast %12 : vector<1x256xf32> to vector<2x256xf32>
    %14 = arith.addf %11, %13 : vector<2x256xf32>
    %15 = vector.extract_strided_slice %14 {offsets = [0, 0], sizes = [2, 128], strides = [1, 1]} : vector<2x256xf32> to vector<2x128xf32>
    %16 = vector.extract_strided_slice %14 {offsets = [0, 128], sizes = [2, 128], strides = [1, 1]} : vector<2x256xf32> to vector<2x128xf32>
    %cst_10 = arith.constant dense<0.000000e+00> : vector<2x64xf32>
    %17 = vector.multi_reduction <add>, %0, %cst_10 [2] : vector<2x64x128xf32> to vector<2x64xf32>
    %18 = vector.shape_cast %17 : vector<2x64xf32> to vector<2x64x1xf32>
    %cst_11 = arith.constant 1.280000e+02 : f32
    %19 = vector.broadcast %cst_11 : f32 to vector<2x64x1xf32>
    %20 = arith.divf %18, %19 : vector<2x64x1xf32>
    %21 = vector.broadcast %20 : vector<2x64x1xf32> to vector<2x64x128xf32>
    %22 = arith.subf %0, %21 : vector<2x64x128xf32>
    %23 = arith.mulf %22, %22 : vector<2x64x128xf32>
    %cst_12 = arith.constant dense<0.000000e+00> : vector<2x64xf32>
    %24 = vector.multi_reduction <add>, %23, %cst_12 [2] : vector<2x64x128xf32> to vector<2x64xf32>
    %25 = vector.shape_cast %24 : vector<2x64xf32> to vector<2x64x1xf32>
    %cst_13 = arith.constant 1.280000e+02 : f32
    %26 = vector.broadcast %cst_13 : f32 to vector<2x64x1xf32>
    %27 = arith.divf %25, %26 : vector<2x64x1xf32>
    %cst_14 = arith.constant 9.99999997E-7 : f32
    %28 = vector.broadcast %cst_14 : f32 to vector<2x64x1xf32>
    %29 = arith.addf %27, %28 : vector<2x64x1xf32>
    %30 = math.rsqrt %29 : vector<2x64x1xf32>
    %31 = vector.broadcast %30 : vector<2x64x1xf32> to vector<2x64x128xf32>
    %32 = arith.mulf %22, %31 : vector<2x64x128xf32>
    %33 = vector.shape_cast %16 : vector<2x128xf32> to vector<2x1x128xf32>
    %cst_15 = arith.constant 1.000000e+00 : f32
    %34 = vector.broadcast %cst_15 : f32 to vector<2x1x128xf32>
    %35 = arith.addf %34, %33 : vector<2x1x128xf32>
    %36 = vector.broadcast %35 : vector<2x1x128xf32> to vector<2x64x128xf32>
    %37 = arith.mulf %32, %36 : vector<2x64x128xf32>
    %38 = vector.shape_cast %15 : vector<2x128xf32> to vector<2x1x128xf32>
    %39 = vector.broadcast %38 : vector<2x1x128xf32> to vector<2x64x128xf32>
    %40 = arith.addf %37, %39 : vector<2x64x128xf32>
    %41 = vector.shape_cast %40 : vector<2x64x128xf32> to vector<128x128xf32>
    %42 = arith.truncf %41 : vector<128x128xf32> to vector<128x128xbf16>
    %c0_16 = arith.constant 0 : index
    %c0_17 = arith.constant 0 : index
    %43 = vector.load %arg5[%c0_16, %c0_17] : memref<128x128xbf16, #tpu.memory_space<vmem>>, vector<128x128xbf16>
    %cst_18 = arith.constant dense<0.000000e+00> : vector<128x128xf32>
    %44 = tpu.matmul %42, %43, %cst_18 {dimension_numbers = #tpu.dot_dimension_numbers<[1], [0], [0], [1], [0, 0, 1, 1], [], []>} : vector<128x128xbf16>, vector<128x128xbf16>, vector<128x128xf32> -> vector<128x128xf32>
    %c0_19 = arith.constant 0 : index
    %c0_20 = arith.constant 0 : index
    %45 = vector.load %arg6[%c0_19, %c0_20] : memref<1x128xf32, #tpu.memory_space<vmem>>, vector<1x128xf32>
    %46 = vector.broadcast %45 : vector<1x128xf32> to vector<128x128xf32>
    %47 = arith.addf %44, %46 : vector<128x128xf32>
    %48 = vector.shape_cast %47 : vector<128x128xf32> to vector<2x64x128xf32>
    %c0_21 = arith.constant 0 : index
    %c0_22 = arith.constant 0 : index
    %c0_23 = arith.constant 0 : index
    %49 = vector.load %arg7[%c0_21, %c0_22, %c0_23] : memref<2x64x128xf32, #tpu.memory_space<vmem>>, vector<2x64x128xf32>
    tpu.vector_store %arg7[%c0_21, %c0_22, %c0_23], %48 {strides = array<i32>} : memref<2x64x128xf32, #tpu.memory_space<vmem>>, vector<2x64x128xf32>,
    return
  }
  func.func @transform_0(%arg0: i32) -> (i32, i32, i32) {
    %c0_i32 = arith.constant 0 : i32
    %c0_i32_0 = arith.constant 0 : i32
    %c0_i32_1 = arith.constant 0 : i32
    return %arg0, %c0_i32, %c0_i32_0 : i32, i32, i32
  }
  func.func @transform_1(%arg0: i32) -> (i32, i32, i32) {
    %c0_i32 = arith.constant 0 : i32
    %c0_i32_0 = arith.constant 0 : i32
    %c0_i32_1 = arith.constant 0 : i32
    return %arg0, %c0_i32, %c0_i32_0 : i32, i32, i32
  }
  func.func @transform_2(%arg0: i32) -> (i32, i32) {
    %c0_i32 = arith.constant 0 : i32
    %c0_i32_0 = arith.constant 0 : i32
    %c0_i32_1 = arith.constant 0 : i32
    return %c0_i32, %c0_i32_0 : i32, i32
  }
  func.func @transform_3(%arg0: i32) -> (i32, i32) {
    %c0_i32 = arith.constant 0 : i32
    %c0_i32_0 = arith.constant 0 : i32
    %c0_i32_1 = arith.constant 0 : i32
    return %c0_i32, %c0_i32_0 : i32, i32
  }
  func.func @transform_4(%arg0: i32) -> (i32, i32) {
    %c0_i32 = arith.constant 0 : i32
    %c0_i32_0 = arith.constant 0 : i32
    %c0_i32_1 = arith.constant 0 : i32
    return %c0_i32, %c0_i32_0 : i32, i32
  }
  func.func @transform_5(%arg0: i32) -> (i32, i32) {
    %c0_i32 = arith.constant 0 : i32
    %c0_i32_0 = arith.constant 0 : i32
    %c0_i32_1 = arith.constant 0 : i32
    return %c0_i32, %c0_i32_0 : i32, i32
  }
  func.func @transform_6(%arg0: i32) -> (i32, i32, i32) {
    %c0_i32 = arith.constant 0 : i32
    %c0_i32_0 = arith.constant 0 : i32
    %c0_i32_1 = arith.constant 0 : i32
    return %arg0, %c0_i32, %c0_i32_0 : i32, i32, i32
  }
}

</mosaic_0001>

<bundles_post_ra>
// kernel: tpu_custom_call.1
= control target key start
LH: loop header
LB: loop body
LE: loop exit
PB: predicated region body
PF: predicated region fallthrough
CT: control target
= control target key end

     0   :  { %s2128_s0 = inlined_call_operand.hbm [shape: f32[4,64,128], index: 0, kind: input, shape index: {}]   ;;  %s2129_s1 = inlined_call_operand.hbm [shape: f32[2,2,128], index: 1, kind: input, shape index: {}]   ;;  %s2130_s2 = inlined_call_operand.hbm [shape: bf16[128,256], index: 2, kind: input, shape index: {}]   ;;  %s2131_s3 = inlined_call_operand.vmem [shape: f32[1,256], index: 3, kind: input, shape index: {}]   ;;  %s2132_s4 = inlined_call_operand.hbm [shape: bf16[128,128], index: 4, kind: input, shape index: {}]   ;;  %s2133_s5 = inlined_call_operand.vmem [shape: f32[1,128], index: 5, kind: input, shape index: {}]   ;;  %s2134_s6 = inlined_call_operand.hbm [shape: f32[4,64,128], index: 6, kind: output, shape index: {}]  }
   0x1   :  { %2141 = sst [smem:[#allocation17_spill]] %s2128_s0 }
   0x2   :  { %2142 = sst [smem:[#allocation18_spill]] %s2130_s2 }
   0x3   :  { %2143 = sst [smem:[#allocation19_spill]] %s2132_s4 }
   0x4   :  { %11 = vsyncpa [#allocation3], 0 }
   0x5   :  { %13 = vsyncpa [#allocation3 + $0x1], 0 }
   0x6   :  { %14 = vsyncpa [#allocation6], 0 }
   0x7   :  { %16 = vsyncpa [#allocation6 + $0x1], 0 }
   0x8   :  { %17 = vsyncpa [#allocation9], 0 }
   0x9   :  { %18 = vsyncpa [#allocation4], 0 }
   0xa   :  { %20 = vsyncpa [#allocation4 + $0x1], 0  ;;  %s1610_s21 = smov 0   ;;  %s1612_s22 = smov 0  }
   0xb   :  { %s1614_s23 = smov 0   ;;  %s1616_s24 = smov 0  }
   0xc LB: > { %s1631_s25 = sadd.s32 4294967295, %s1560_s24   ;;  %s1117_s26 = sadd.s32 4294967294, %s1560_s24   ;;  %s1560_s24 = sphi %s1616_s24, %s2171_s24   ;;  %s1556_s23 = sphi %s1614_s23, %s2170_s23   ;;  %s1552_s22 = sphi %s1612_s22, %s2169_s22   ;;  %s1548_s21 = sphi %s1610_s21, %s2168_s21  }
   0xd   : > { %p46_p0 = scmp.ne.s32.totalorder %s1552_s22, %s1548_s21  ;;  %p2135_p1 = scmp.eq.s32.totalorder %s1631_s25, 0 }
   0xe   : > { %p186_p3 = scmp.eq.s32.totalorder %s1117_s26, 1  ;;  %p1118_p5 = scmp.ge.s32.totalorder %s1560_s24, 1 }
   0xf   : > { %p1640_p4 = por %p2135_p1, %p46_p0  ;;  %p193_p7 = scmp.lt.s32.totalorder %s1560_s24, 3 }
  0x10   : > { %p1645_p6 = por %p186_p3, %p46_p0  ;;  %s1562_s30 = smov [#allocation7]  }
  0x11   : > { %s2144_s27 = scalar_select %p1640_p4, 1, 0 }
  0x12   : > { %s2145_s28 = scalar_select %p1645_p6, 1, 0 }
  0x13   : > { %p1650_p8 = pnand %p1118_p5, %p193_p7  ;;  %s205_s7 = sshll.u32 %s1562_s30, 4  ;;  %s1654_s7 = int_to_ptr.vmem [resolvable:$true] %s205_s7 }
  0x14   : > { %s1563_s9 = smov [#allocation8]   ;;  %s2148_s2 = sld [smem:[#allocation18_spill]] }
  0x15   : > { %s2146_s29 = scalar_select %p1650_p8, 1, 0 }
  0x16   : > { %p1232_p9 = pneg %p1650_p8  ;;  %s221_s10 = sshll.u32 %s1563_s9, 4  ;;  %s1665_s10 = int_to_ptr.vmem [resolvable:$true] %s221_s10 }
  0x18   : > { %p1661_p11 = pnand %p1232_p9, %p2135_p1 }
  0x1a   : > { %s1366_s13 = scalar_lea.hbm %s2148_s2, 2048  ;;  %p1368_p13 = pneg %p1661_p11 }
  0x1b   : > { %p1367_p12 = scmp.ne.s32.totalorder %s2148_s2, %s1366_s13  ;;  %p1373_p5 = scmp.lt.u32.totalorder %s1366_s13, %s2148_s2 }
  0x1d   : > { %p1369_p0 = pnand %p1368_p13, %p1367_p12 }
  0x1f   : > { %p1370_p3 = pneg %p1369_p0 }
  0x21   : > { %p1375_p7 = pnand %p1373_p5, %p1370_p3 }
  0x23   : > { %1378 = shalt.err (!%p1375_p7)
}
  0x24   : > { %s1379_s18 = scalar_lea.vmem %s1654_s7, 2048  ;;  %p1387_p2 = scmp.lt.s32.totalorder %s1654_s7, %s1654_s7 }
  0x25   : > { %p1380_p9 = scmp.ne.s32.totalorder %s1654_s7, %s1379_s18  ;;  %p1388_p12 = scmp.lt.s32.totalorder %s1379_s18, %s1379_s18 }
  0x27   : > { %p1382_p10 = pnand %p1380_p9, %p1368_p13  ;;  %p1389_p0 = por %p1388_p12, %p1387_p2 }
  0x29   : > { %p1383_p1 = pneg %p1382_p10 }
  0x2b   : > { %p1390_p6 = pnand %p1389_p0, %p1383_p1 }
  0x2d   : > { %1393 = shalt.err (!%p1390_p6)
}
  0x2e   : > { %s2136_s19 = smov 128   ;;  %s2137_s20 = smov 8  }
  0x2f   : > { %1235 = dma.hbm_to_vmem [thread:$0]  (!%p1661_p11), %s2148_s2, 2048, %s1654_s7, [#allocation6], %s2136_s19, %s2136_s19, %s2137_s20  }
  0x30   : > { %s2149_s4 = sld [smem:[#allocation19_spill]] }
  0x36   : > { %s1394_s12 = scalar_lea.hbm %s2149_s4, 1024 }
  0x37   : > { %p1395_p1 = scmp.ne.s32.totalorder %s2149_s4, %s1394_s12  ;;  %p1401_p10 = scmp.lt.u32.totalorder %s1394_s12, %s2149_s4 }
  0x39   : > { %p1397_p2 = pnand %p1395_p1, %p1368_p13 }
  0x3b   : > { %p1398_p6 = pneg %p1397_p2 }
  0x3d   : > { %p1403_p3 = pnand %p1401_p10, %p1398_p6 }
  0x3f   : > { %1406 = shalt.err (!%p1403_p3)
}
  0x40   : > { %s1407_s7 = scalar_lea.vmem %s1665_s10, 1024  ;;  %p1415_p12 = scmp.lt.s32.totalorder %s1665_s10, %s1665_s10 }
  0x41   : > { %p1408_p5 = scmp.ne.s32.totalorder %s1665_s10, %s1407_s7  ;;  %p1416_p0 = scmp.lt.s32.totalorder %s1407_s7, %s1407_s7 }
  0x43   : > { %p1410_p7 = pnand %p1408_p5, %p1368_p13  ;;  %p1417_p1 = por %p1416_p0, %p1415_p12 }
  0x45   : > { %p1411_p9 = pneg %p1410_p7 }
  0x47   : > { %p1418_p2 = pnand %p1417_p1, %p1411_p9 }
  0x49   : > { %1421 = shalt.err (!%p1418_p2)
}
  0x4a   : > { %s1566_s17 = smov 64   ;;  %s1567_s18 = smov 4  }
  0x4b   : > { %1238 = dma.hbm_to_vmem [thread:$0]  (!%p1661_p11), %s2149_s4, 1024, %s1665_s10, [#allocation9], %s1566_s17, %s1566_s17, %s1567_s18  }
  0x4c   : > { %s1723_s9 = sadd.s32 1, %s1560_s24   ;;  %s33_s12 = sadd.s32 1, %s1556_s23 }
  0x4d   : > { %s30_s11 = ssub.s32 %s1560_s24, %s1723_s9  ;;  %p40_p6 = scmp.ne.s32.totalorder %s1556_s23, %s1552_s22 }
  0x4e   : > { %p31_p13 = scmp.eq.s32.totalorder %s30_s11, 0  ;;  %p41_p10 = scmp.eq.s32.totalorder %s1560_s24, 0 }
  0x4f   : > { %p2151_p5 = scmp.eq.s32.totalorder %s1631_s25, 1  ;;  %p1252_p9 = scmp.lt.s32.totalorder %s1560_s24, 2 }
  0x50   : > { %s1732_s13 = scalar_select %p31_p13, %s1556_s23, %s33_s12  }
  0x51   : > { %p42_p3 = por %p41_p10, %p40_p6  ;;  %p1736_p7 = por %p2151_p5, %p40_p6 }
  0x52   : > { %2150 = sst [smem:[#allocation16_spill]] %s1732_s13  ;;  %s1742_s8 = sand.u32 1, %s1556_s23  }
  0x53   : > { %s2152_s14 = scalar_select %p1736_p7, 1, 0 }
  0x54   : > { %s1122_s10 = sshll.u32 %s1742_s8, 7  ;;  %s1167_s15 = sshll.u32 %s1560_s24, 11 }
  0x55   : > { %s2153_s0 = sld [smem:[#allocation17_spill]]  ;;  %s242_s18 = scalar_lea.vmem [#allocation2], %s1122_s10 }
  0x56   : > { %s250_s26 = sshll.u32 %s242_s18, 4  ;;  %p1753_p11 = pnand %p1252_p9, %p42_p3  ;;  %s1751_s26 = int_to_ptr.vmem [resolvable:$true] %s250_s26 }
  0x57   : > { %s1126_s12 = sshll.u32 %s1742_s8, 1  ;;  %s239_s19 = scalar_lea.sflag [#allocation3], %s1742_s8 }
  0x58   : > { %p1424_p0 = pneg %p1753_p11 }
  0x5b   : > { %s1749_s17 = scalar_lea.hbm %s2153_s0, %s1167_s15  ;;  %s1427_s7 = scalar_lea.hbm %s2153_s0, 4096 }
  0x5c   : > { %s1422_s16 = scalar_lea.hbm %s1749_s17, 2048  ;;  %p1428_p13 = scmp.lt.u32.totalorder %s1749_s17, %s2153_s0 }
  0x5d   : > { %p1423_p12 = scmp.ne.s32.totalorder %s1749_s17, %s1422_s16  ;;  %p1429_p6 = scmp.lt.u32.totalorder %s1427_s7, %s1422_s16 }
  0x5e   : > { %p1431_p3 = scmp.lt.u32.totalorder %s1422_s16, %s1749_s17 }
  0x5f   : > { %p1425_p1 = pnand %p1424_p0, %p1423_p12  ;;  %p1430_p10 = por %p1429_p6, %p1428_p13 }
  0x61   : > { %p1426_p2 = pneg %p1425_p1  ;;  %p1432_p5 = por %p1431_p3, %p1430_p10 }
  0x63   : > { %p1433_p9 = pnand %p1432_p5, %p1426_p2 }
  0x65   : > { %1436 = shalt.err (!%p1433_p9)
}
  0x66   : > { %s1437_s11 = scalar_lea.vmem %s1751_s26, 2048  ;;  %s1568_s10 = smov [#allocation2]  }
  0x67   : > { %p1438_p12 = scmp.ne.s32.totalorder %s1751_s26, %s1437_s11  ;;  %s1442_s15 = sshll.u32 %s1568_s10, 4  ;;  %s1443_s15 = int_to_ptr.vmem [resolvable:$false] %s1442_s15 }
  0x68   : > { %s1444_s20 = scalar_lea.vmem %s1443_s15, 4096  ;;  %p1445_p4 = scmp.lt.s32.totalorder %s1751_s26, %s1443_s15 }
  0x69   : > { %p1440_p1 = pnand %p1438_p12, %p1424_p0  ;;  %p1446_p13 = scmp.lt.s32.totalorder %s1444_s20, %s1437_s11 }
  0x6b   : > { %p1441_p7 = pneg %p1440_p1  ;;  %p1447_p6 = por %p1446_p13, %p1445_p4 }
  0x6d   : > { %p1448_p10 = pnand %p1447_p6, %p1441_p7 }
  0x6f   : > { %1451 = shalt.err (!%p1448_p10)
}
  0x70   : > { %s2155_s16 = smov 8   ;;  %s2156_s7 = smov 128  }
  0x71   : > { %1242 = dma.hbm_to_vmem [thread:$0]  (!%p1753_p11), %s1749_s17, 2048, %s1751_s26, %s239_s19, %s2156_s7, %s2156_s7, %s2155_s16  }
  0x72   : > { %s1127_s18 = sshll.u32 %s1560_s24, 5  ;;  %s264_s20 = scalar_lea.vmem [#allocation5], %s1126_s12 }
  0x73   : > { %s1794_s15 = scalar_lea.hbm %s2129_s1, %s1127_s18  ;;  %s271_s0 = sshll.u32 %s264_s20, 4  ;;  %s272_s0 = int_to_ptr.vmem [resolvable:$true] %s271_s0 }
  0x74   : > { %s2157_s2 = sand.u32 1, %s1560_s24   ;;  %s1452_s13 = scalar_lea.hbm %s1794_s15, 32 }
  0x75   : > { %s261_s4 = scalar_lea.sflag [#allocation6], %s2157_s2  ;;  %p1453_p4 = scmp.ne.s32.totalorder %s1794_s15, %s1452_s13 }
  0x76   : > { %s1457_s26 = scalar_lea.hbm %s2129_s1, 64  ;;  %p1458_p3 = scmp.lt.u32.totalorder %s1794_s15, %s2129_s1 }
  0x77   : > { %p1455_p7 = pnand %p1453_p4, %p1424_p0  ;;  %p1459_p5 = scmp.lt.u32.totalorder %s1457_s26, %s1452_s13 }
  0x78   : > { %p1461_p12 = scmp.lt.u32.totalorder %s1452_s13, %s1794_s15 }
  0x79   : > { %p1456_p2 = pneg %p1455_p7  ;;  %p1460_p9 = por %p1459_p5, %p1458_p3 }
  0x7b   : > { %p1462_p1 = por %p1461_p12, %p1460_p9 }
  0x7d   : > { %p1463_p13 = pnand %p1462_p1, %p1456_p2 }
  0x7f   : > { %1466 = shalt.err (!%p1463_p13)
}
  0x80   : > { %s1467_s2 = scalar_lea.vmem %s272_s0, 32  ;;  %s1569_s12 = smov [#allocation5]  }
  0x81   : > { %p1468_p6 = scmp.ne.s32.totalorder %s272_s0, %s1467_s2  ;;  %s1472_s7 = sshll.u32 %s1569_s12, 4  ;;  %s1473_s7 = int_to_ptr.vmem [resolvable:$false] %s1472_s7 }
  0x82   : > { %s1474_s18 = scalar_lea.vmem %s1473_s7, 64  ;;  %p1475_p7 = scmp.lt.s32.totalorder %s272_s0, %s1473_s7 }
  0x83   : > { %p1470_p10 = pnand %p1468_p6, %p1424_p0  ;;  %p1476_p8 = scmp.lt.s32.totalorder %s1474_s18, %s1467_s2 }
  0x85   : > { %p1471_p4 = pneg %p1470_p10  ;;  %p1477_p3 = por %p1476_p8, %p1475_p7 }
  0x87   : > { %p1478_p5 = pnand %p1477_p3, %p1471_p4 }
  0x89   : > { %1481 = shalt.err (!%p1478_p5)
}
  0x8a   : > { %1245 = dma.hbm_to_vmem [thread:$0]  (!%p1753_p11), %s1794_s15, 32, %s272_s0, %s261_s4  }
  0x8b   : > { %p2158_p2 = scmp.ne.s32.totalorder %s2146_s29, 0 }
  0x8c   : > { %s1822_s13 = sand.u32 (!%p2158_p2), 1, %s1552_s22   ;;  %p2159_p8 = scmp.ne.s32.totalorder (!%p2158_p2), %s2144_s27, 0 }
  0x8d   : > { %280 = sbr.rel (%p2158_p2) target bundleno = 737 (0x2e1), region = 44  ;;  %s1129_s10 = sshll.u32 (!%p2158_p2), %s1822_s13, 7 }
  0x8e   : > { %s283_s11 = scalar_lea.sflag (!%p2158_p2), [#allocation3], %s1822_s13  ;;  %s1828_s20 = scalar_lea.vmem (!%p2158_p2), [#allocation2], %s1129_s10 }
  0x94   : > { %1527 = dma.done.wait (%p2159_p8), %s283_s11, 2048  }
  0x95   : > { %1529 = vsyncadd (%p2159_p8), %s283_s11, 4294965248  ;;  %s291_s0 = sand.u32 1, %s1631_s25   ;;  %s1130_s4 = sshll.u32 %s1822_s13, 1 }
  0x96   : > { %s292_s29 = scalar_lea.sflag [#allocation6], %s291_s0  ;;  %s1836_s30 = scalar_lea.vmem [#allocation5], %s1130_s4 }
  0x97   : > { %1531 = dma.done.wait (%p2159_p8), %s292_s29, 32  }
  0x98   : > { %1533 = vsyncadd (%p2159_p8), %s292_s29, 4294967264  ;;  %p2160_p11 = scmp.eq.s32.totalorder %s1631_s25, 0 }
  0x9a   : > { %1535 = dma.done.wait (%p2160_p11), [#allocation6], 2048   ;;  %p2161_p0 = pmov %p2160_p11 }
  0x9c   : > { %1537 = vsyncadd (%p2161_p0), [#allocation6], 4294965248  ;;  %p2162_p9 = pmov %p2161_p0 }
  0x9d   : > { %p2163_p12 = pmov %p2161_p0 }
  0x9e   : > { %1539 = dma.done.wait (%p2162_p9), [#allocation9], 1024  }
  0x9f   : > { %1541 = vsyncadd (%p2163_p12), [#allocation9], 4294966272  ;;  %v1570_v0 = vmov 0   ;;  %v1851_v1 = vld [vmem:[%s1828_s20] sm:$0xff]  ;;  %v1854_v2 = vld [vmem:[%s1828_s20 + $0x10] sm:$0xff]  ;;  %s2059_s26 = scalar_lea.vmem [#allocation10], %s1129_s10 }
  0xa0   : > { %505 = vmatprep.mubr.bf16.mxu0 %v1570_v0  ;;  %514 = vadd.xlane.f32.xlu0 %v1851_v1  ;;  %v1859_v3 = vld [vmem:[%s1828_s20 + $0x8] sm:$0xff]  ;;  %v1862_v4 = vld [vmem:[%s1828_s20 + $0x18] sm:$0xff]  ;;  %v1865_v5 = vld [vmem:[%s1828_s20 + $0x20] sm:$0xff]  ;;  %s1169_s8 = sshll.u32 %s1631_s25, 11  ;;  %s1002_s16 = sshll.u32 %s2059_s26, 4  ;;  %s2081_s16 = int_to_ptr.vmem [resolvable:$true] %s1002_s16 }
  0xa1   : > { %518 = vadd.xlane.f32.xlu1 %v1854_v2  ;;  %v1870_v6 = vld [vmem:[%s1828_s20 + $0x28] sm:$0xff]  ;;  %v1301_v9 = vld [vmem:[#allocation7 + $0x14] ss:$8 sps:$4 sm:$0xff]   ;;  %v1875_v10 = vld [vmem:[%s1828_s20 + $0x30] sm:$0xff]  ;;  %s2079_s7 = scalar_lea.hbm %s2134_s6, %s1169_s8  ;;  %s988_s25 = scalar_lea.sflag [#allocation4], %s1822_s13 }
  0xa2   : > { %v1298_v7 = vld [vmem:[#allocation7 + $0x4] ss:$8 sps:$4 sm:$0xff]   ;;  %v1300_v8 = vld [vmem:[#allocation7] ss:$8 sps:$4 sm:$0xff]   ;;  %v1878_v11 = vld [vmem:[%s1828_s20 + $0x38] sm:$0xff]  ;;  %s1482_s18 = scalar_lea.vmem %s2081_s16, 2048 }
  0xa3   : > { %473 = vmatprep.subr.bf16.mxu0 %v1298_v7  ;;  %v1303_v12 = vld [vmem:[#allocation7 + $0x10] ss:$8 sps:$4 sm:$0xff]   ;;  %v1304_v13 = vld [vmem:[#allocation7 + $0x24] ss:$8 sps:$4 sm:$0xff]   ;;  %v1883_v14 = vld [vmem:[%s1828_s20 + $0x40] sm:$0xff]  ;;  %p1483_p1 = scmp.ne.s32.totalorder %s2081_s16, %s1482_s18  ;;  %p2164_p13 = scmp.ne.s32.totalorder %s2152_s14, 0 }
  0xa4   : > { %516 = vadd.xlane.f32.xlu0 %v1859_v3  ;;  %474 = vmatpush1.bf16.msra.mxu0 %v1300_v8  ;;  %v1886_v15 = vld [vmem:[%s1828_s20 + $0x48] sm:$0xff]  ;;  %v1307_v17 = vld [vmem:[#allocation7 + $0x34] ss:$8 sps:$4 sm:$0xff]   ;;  %v1889_v18 = vld [vmem:[%s1828_s20 + $0x50] sm:$0xff]  ;;  %s1572_s10 = smov [#allocation10]  }
  0xa5   : > { %520 = vadd.xlane.f32.xlu1 %v1862_v4  ;;  %475 = vmatprep.subr.bf16.mxu0 %v1301_v9  ;;  %v1306_v16 = vld [vmem:[#allocation7 + $0x20] ss:$8 sps:$4 sm:$0xff]   ;;  %v1892_v19 = vld [vmem:[%s1828_s20 + $0x58] sm:$0xff]  ;;  %v356_v21 = vld [vmem:[%s1836_s30] sm:$0x3]  ;;  %p1484_p6 = pnand %p1483_p1, %p2164_p13  ;;  %s1486_s11 = sshll.u32 %s1572_s10, 4  ;;  %s1487_s11 = int_to_ptr.vmem [resolvable:$false] %s1486_s11 }
  0xa6   : > { %v1309_v20 = vld [vmem:[#allocation7 + $0x30] ss:$8 sps:$4 sm:$0xff]   ;;  %v1310_v22 = vld [vmem:[#allocation7 + $0x44] ss:$8 sps:$4 sm:$0xff]   ;;  %v1134_v23 = vmul.f32 -1.442695, %v356_v21  ;;  %p1489_p4 = scmp.lt.s32.totalorder %s2081_s16, %s1487_s11 }
  0xa7   : > { %v1900_v24 = vld [vmem:[%s1828_s20 + $0x60] sm:$0xff]  ;;  %v1903_v25 = vld [vmem:[%s1828_s20 + $0x68] sm:$0xff]  ;;  %v1908_v28 = vld [vmem:[%s1828_s20 + $0x70] sm:$0xff]  ;;  %p1485_p10 = pneg %p1484_p6 }
  0xa8   : > { %522 = vadd.xlane.f32.xlu0 %v1865_v5  ;;  %476 = vmatpush1.bf16.msra.mxu0 %v1303_v12  ;;  %1330 = vpow2.f32 %v1134_v23  ;;  %v1312_v26 = vld [vmem:[#allocation7 + $0x40] ss:$8 sps:$4 sm:$0xff]   ;;  %v1313_v27 = vld [vmem:[#allocation7 + $0x54] ss:$8 sps:$4 sm:$0xff]   ;;  %v1315_v30 = vld [vmem:[#allocation7 + $0x50] ss:$8 sps:$4 sm:$0xff]  }
  0xa9   : > { %524 = vadd.xlane.f32.xlu1 %v1870_v6  ;;  %477 = vmatprep.subr.bf16.mxu0 %v1304_v13  ;;  %v1911_v29 = vld [vmem:[%s1828_s20 + $0x78] sm:$0xff]  ;;  %v1316_v31 = vld [vmem:[#allocation7 + $0x64] ss:$8 sps:$4 sm:$0xff]   ;;  %v1318_v33 = vld [vmem:[#allocation7 + $0x60] ss:$8 sps:$4 sm:$0xff]   ;;  %s1488_s20 = scalar_lea.vmem %s1487_s11, 4096 }
  0xaa   : > { %v1319_v35 = vld [vmem:[#allocation7 + $0x74] ss:$8 sps:$4 sm:$0xff]   ;;  %v1321_v36 = vld [vmem:[#allocation7 + $0x70] ss:$8 sps:$4 sm:$0xff]   ;;  %v1322_v40 = vld [vmem:[#allocation8] sm:$0xff]   ;;  %p1490_p7 = scmp.lt.s32.totalorder %s1488_s20, %s1482_s18 }
  0xab   : > { %1186 = vmatprep.subr.bf16.mxu1 %v1322_v40 }
  0xac   : > { %526 = vadd.xlane.f32.xlu0 %v1875_v10  ;;  %478 = vmatpush1.bf16.msra.mxu0 %v1306_v16  ;;  %p1491_p3 = por %p1490_p7, %p1489_p4 }
  0xad   : > { %528 = vadd.xlane.f32.xlu1 %v1878_v11  ;;  %479 = vmatprep.subr.bf16.mxu0 %v1307_v17 }
  0xae   : > { %1187 = vmatpush3.bf16.msra.mxu1 %v1322_v40  ;;  %p1492_p5 = pnand %p1491_p3, %p1485_p10 }
  0xb0   : > { %530 = vadd.xlane.f32.xlu0 %v1883_v14  ;;  %480 = vmatpush1.bf16.msra.mxu0 %v1309_v20 }
  0xb1   : > { %532 = vadd.xlane.f32.xlu1 %v1886_v15  ;;  %481 = vmatprep.subr.bf16.mxu0 %v1310_v22 }
  0xb2   : > { %v1331_v32 = vpop.eup %1330 }
  0xb3   : > { %v360_v34 = vadd.f32 1.0, %v1331_v32 }
  0xb4   : > { %534 = vadd.xlane.f32.xlu0 %v1889_v18  ;;  %482 = vmatpush1.bf16.msra.mxu0 %v1312_v26  ;;  %v1323_v26 = vld [vmem:[#allocation8 + $0x8] sm:$0xff]  }
  0xb5   : > { %536 = vadd.xlane.f32.xlu1 %v1892_v19  ;;  %483 = vmatprep.subr.bf16.mxu0 %v1313_v27  ;;  %1332 = vrcp.f32 %v360_v34 }
  0xb6   : > { %1188 = vmatprep.subr.bf16.mxu1 %v1323_v26 }
  0xb7   : > { %1189 = vmatpush3.bf16.msra.mxu1 %v1323_v26 }
  0xb8   : > { %538 = vadd.xlane.f32.xlu0 %v1900_v24  ;;  %484 = vmatpush1.bf16.msra.mxu0 %v1315_v30 }
  0xb9   : > { %540 = vadd.xlane.f32.xlu1 %v1903_v25  ;;  %485 = vmatprep.subr.bf16.mxu0 %v1316_v31 }
  0xbc   : > { %542 = vadd.xlane.f32.xlu0 %v1908_v28  ;;  %486 = vmatpush1.bf16.msra.mxu0 %v1318_v33 }
  0xbd   : > { %544 = vadd.xlane.f32.xlu1 %v1911_v29  ;;  %487 = vmatprep.subr.bf16.mxu0 %v1319_v35 }
  0xbf   : > { %v1333_v37 = vpop.eup %1332 }
  0xc0   : > { %488 = vmatpush1.bf16.msra.mxu0 %v1321_v36  ;;  %v363_v38 = vmul.f32 %v1333_v37, %v356_v21  ;;  %v1324_v36 = vld [vmem:[#allocation8 + $0x10] sm:$0xff]  }
  0xc1   : > { %1190 = vmatprep.subr.bf16.mxu1 %v1324_v36 }
  0xc2   : > { %v364_v39 = vpack.c.bf16 %v363_v38, %v363_v38  ;;  %1191 = vmatpush3.bf16.msra.mxu1 %v1324_v36 }
  0xc4   : > { %506 = vmatmul.mubr.bf16.vlgmr.msra.gmra.mrb[0].mxu0 %v364_v39 }
 0x12d   : > { %v515_v41 = vpop.xlane.xlu0 %514 }
 0x12e   : > { %v519_v42 = vpop.xlane.xlu1 %518  ;;  %v547_v43 = vmul.f32 0.0078125, %v515_v41 }
 0x12f   : > { %v549_v44 = vmul.f32 0.0078125, %v519_v42 }
 0x130   : > { %v1916_v45 = vsub.f32 %v1851_v1, %v547_v43  ;;  %v1325_v43 = vld [vmem:[#allocation8 + $0x18] sm:$0xff]  }
 0x131   : > { %v1919_v46 = vsub.f32 %v1854_v2, %v549_v44  ;;  %v517_v47 = vpop.xlane.xlu0 %516  ;;  %1192 = vmatprep.subr.bf16.mxu1 %v1325_v43 }
 0x132   : > { %v521_v48 = vpop.xlane.xlu1 %520  ;;  %v548_v49 = vmul.f32 0.0078125, %v517_v47  ;;  %v579_v50 = vmul.f32 %v1916_v45, %v1916_v45  ;;  %1193 = vmatpush3.bf16.msra.mxu1 %v1325_v43  ;;  %v1326_v47 = vld [vmem:[#allocation8 + $0x20] sm:$0xff]  }
 0x133   : > { %v550_v51 = vmul.f32 0.0078125, %v521_v48  ;;  %v581_v54 = vmul.f32 %v1919_v46, %v1919_v46  ;;  %1194 = vmatprep.subr.bf16.mxu1 %v1326_v47  ;;  %v1328_v48 = vld [vmem:[#allocation8 + $0x30] sm:$0xff]  }
 0x134   : > { %v1924_v52 = vsub.f32 %v1859_v3, %v548_v49  ;;  %595 = vadd.xlane.f32.xlu0 %v579_v50  ;;  %v1329_v49 = vld [vmem:[#allocation8 + $0x38] sm:$0xff]  }
 0x135   : > { %v1927_v53 = vsub.f32 %v1862_v4, %v550_v51  ;;  %v523_v55 = vpop.xlane.xlu0 %522 }
 0x136   : > { %v525_v56 = vpop.xlane.xlu1 %524  ;;  %v551_v57 = vmul.f32 0.0078125, %v523_v55  ;;  %v580_v58 = vmul.f32 %v1924_v52, %v1924_v52  ;;  %1195 = vmatpush3.bf16.msra.mxu1 %v1326_v47 }
 0x137   : > { %v552_v59 = vmul.f32 0.0078125, %v525_v56  ;;  %v582_v62 = vmul.f32 %v1927_v53, %v1927_v53  ;;  %v383_v56 = vlaneseq }
 0x138   : > { %v1934_v60 = vsub.f32 %v1865_v5, %v551_v57  ;;  %599 = vadd.xlane.f32.xlu0 %v581_v54  ;;  %597 = vadd.xlane.f32.xlu1 %v580_v58  ;;  %v1571_v58 = vmov 1966171168  }
 0x139   : > { %v1937_v61 = vsub.f32 %v1870_v6, %v552_v59  ;;  %v527_v63 = vpop.xlane.xlu0 %526  ;;  %v384_v57 = vshrl.u32 %v383_v56, 7  ;;  %v693_v59 = vunpack.c.l.s4 %v1571_v58 }
 0x13a   : > { %v529_v0 = vpop.xlane.xlu1 %528  ;;  %v553_v1 = vmul.f32 0.0078125, %v527_v63  ;;  %v583_v2 = vmul.f32 %v1934_v60, %v1934_v60  ;;  %v381_v63 = vld [vmem:[%s2131_s3] sm:$0x3] }
 0x13b   : > { %v554_v3 = vmul.f32 0.0078125, %v529_v0  ;;  %v584_v6 = vmul.f32 %v1937_v61, %v1937_v61  ;;  %v694_v0 = vunpack.c.0.s8 %v693_v59 }
 0x13c   : > { %v1944_v4 = vsub.f32 %v1875_v10, %v553_v1  ;;  %601 = vadd.xlane.f32.xlu1 %v582_v62  ;;  %603 = vadd.xlane.f32.xlu0 %v583_v2  ;;  %v389_v62 = vsub.s32 1, %v384_v57  ;;  %v1998_v2 = vsub.s32 0, %v384_v57 }
 0x13d   : > { %v1947_v5 = vsub.f32 %v1878_v11, %v554_v3  ;;  %v531_v7 = vpop.xlane.xlu0 %530  ;;  %v2000_v3 = vsub.s32 %v694_v0, %v384_v57 }
 0x13e   : > { %v533_v8 = vpop.xlane.xlu1 %532  ;;  %v555_v9 = vmul.f32 0.0078125, %v531_v7  ;;  %v585_v12 = vmul.f32 %v1944_v4, %v1944_v4  ;;  %v390_v1 = vrot.slane %v381_v63, %v389_v62 }
 0x13f   : > { %v556_v13 = vmul.f32 0.0078125, %v533_v8  ;;  %v586_v11 = vmul.f32 %v1947_v5, %v1947_v5  ;;  %v386_v8 = vrot.slane %v381_v63, %v1998_v2 }
 0x140   : > { %v1954_v16 = vsub.f32 %v1883_v14, %v555_v9  ;;  %605 = vadd.xlane.f32.xlu1 %v584_v6  ;;  %607 = vadd.xlane.f32.xlu0 %v585_v12 }
 0x141   : > { %v1957_v10 = vsub.f32 %v1886_v15, %v556_v13  ;;  %v535_v17 = vpop.xlane.xlu0 %534 }
 0x142   : > { %v537_v20 = vpop.xlane.xlu1 %536  ;;  %v557_v21 = vmul.f32 0.0078125, %v535_v17  ;;  %v587_v22 = vmul.f32 %v1954_v16, %v1954_v16 }
 0x143   : > { %v558_v23 = vmul.f32 0.0078125, %v537_v20  ;;  %v588_v15 = vmul.f32 %v1957_v10, %v1957_v10 }
 0x144   : > { %v1964_v27 = vsub.f32 %v1889_v18, %v557_v21  ;;  %609 = vadd.xlane.f32.xlu1 %v586_v11  ;;  %611 = vadd.xlane.f32.xlu0 %v587_v22 }
 0x145   : > { %v1967_v14 = vsub.f32 %v1892_v19, %v558_v23  ;;  %v539_v30 = vpop.xlane.xlu0 %538 }
 0x146   : > { %v541_v31 = vpop.xlane.xlu1 %540  ;;  %v559_v32 = vmul.f32 0.0078125, %v539_v30  ;;  %v589_v33 = vmul.f32 %v1964_v27, %v1964_v27 }
 0x147   : > { %v560_v34 = vmul.f32 0.0078125, %v541_v31  ;;  %v590_v35 = vmul.f32 %v1967_v14, %v1967_v14 }
 0x148   : > { %v1974_v18 = vsub.f32 %v1900_v24, %v559_v32  ;;  %613 = vadd.xlane.f32.xlu1 %v588_v15  ;;  %615 = vadd.xlane.f32.xlu0 %v589_v33 }
 0x149   : > { %v1977_v19 = vsub.f32 %v1903_v25, %v560_v34  ;;  %v543_v37 = vpop.xlane.xlu0 %542 }
 0x14a   : > { %v545_v38 = vpop.xlane.xlu1 %544  ;;  %v561_v39 = vmul.f32 0.0078125, %v543_v37  ;;  %v591_v40 = vmul.f32 %v1974_v18, %v1974_v18 }
 0x14b   : > { %v562_v41 = vmul.f32 0.0078125, %v545_v38  ;;  %v592_v42 = vmul.f32 %v1977_v19, %v1977_v19 }
 0x14c   : > { %v1984_v24 = vsub.f32 %v1908_v28, %v561_v39  ;;  %617 = vadd.xlane.f32.xlu1 %v590_v35  ;;  %619 = vadd.xlane.f32.xlu0 %v591_v40 }
 0x14d   : > { %v1987_v25 = vsub.f32 %v1911_v29, %v562_v41  ;;  %v1327_v29 = vld [vmem:[#allocation8 + $0x28] sm:$0xff]  }
 0x14e   : > { %v593_v44 = vmul.f32 %v1984_v24, %v1984_v24  ;;  %1196 = vmatprep.subr.bf16.mxu1 %v1327_v29 }
 0x14f   : > { %v594_v28 = vmul.f32 %v1987_v25, %v1987_v25  ;;  %1197 = vmatpush3.bf16.msra.mxu1 %v1327_v29 }
 0x150   : > { %621 = vadd.xlane.f32.xlu1 %v592_v42  ;;  %623 = vadd.xlane.f32.xlu0 %v593_v44 }
 0x151   : > { %1198 = vmatprep.subr.bf16.mxu1 %v1328_v48 }
 0x153   : > { %1199 = vmatpush3.bf16.msra.mxu1 %v1328_v48 }
 0x154   : > { %625 = vadd.xlane.f32.xlu1 %v594_v28  ;;  %1200 = vmatprep.subr.bf16.mxu1 %v1329_v49 }
 0x157   : > { %1201 = vmatpush3.bf16.msra.mxu1 %v1329_v49 }
 0x197   : > { %v507_v50 = vpop.f32.mrb[0].mxu0 }
 0x198   : > { %v509_v51 = vpop.f32.mrb[1].mxu0  ;;  %v508_v20 = vadd.f32 %v507_v50, %v386_v8 }
 0x199   : > { %v511_v54 = vpop.f32.mrb[2].mxu0  ;;  %v510_v6 = vadd.f32 %v509_v51, %v390_v1 }
 0x19a   : > { %v512_v55 = vpop.f32.mrb[3].mxu0  ;;  %v2006_v30 = vrot.slane %v508_v20, %v2000_v3 }
 0x19b   : > { %v698_v12 = vrot.slane %v510_v6, %v2000_v3 }
 0x19c   : > { %v761_v38 = vrot.slane %v2006_v30, %v2000_v3 }
 0x19d   : > { %v706_v23 = vrot.slane %v698_v12, %v2000_v3  ;;  %v699_v62 = vcombine.high %v698_v12, %v698_v12 }
 0x19e   : > { %v2014_v29 = vrot.slane %v761_v38, %v1998_v2 }
 0x19f   : > { %v716_v35 = vadd.f32 1.0, %v706_v23 }
 0x1a1   : > { %v2011_v43 = vrot.slane %v716_v35, %v1998_v2 }
 0x1c1   : > { %v596_v7 = vpop.xlane.xlu0 %595 }
 0x1c2   : > { %v627_v9 = vmul.f32 0.0078125, %v596_v7 }
 0x1c4   : > { %v643_v13 = vadd.f32 1e-06, %v627_v9 }
 0x1c5   : > { %v598_v11 = vpop.xlane.xlu1 %597  ;;  %v600_v17 = vpop.xlane.xlu0 %599 }
 0x1c6   : > { %1334 = vrsqrt.f32 %v643_v13  ;;  %v628_v21 = vmul.f32 0.0078125, %v598_v11  ;;  %v629_v22 = vmul.f32 0.0078125, %v600_v17 }
 0x1c8   : > { %v644_v26 = vadd.f32 1e-06, %v628_v21  ;;  %v645_v15 = vadd.f32 1e-06, %v629_v22  ;;  %v713_v21 = vrot.slane %v699_v62, %v2000_v3 }
 0x1c9   : > { %v602_v31 = vpop.xlane.xlu1 %601  ;;  %v604_v32 = vpop.xlane.xlu0 %603 }
 0x1ca   : > { %1336 = vrsqrt.f32 %v644_v26  ;;  %v630_v33 = vmul.f32 0.0078125, %v602_v31  ;;  %v631_v34 = vmul.f32 0.0078125, %v604_v32 }
 0x1cb   : > { %1338 = vrsqrt.f32 %v645_v15 }
 0x1cc   : > { %v646_v36 = vadd.f32 1e-06, %v630_v33  ;;  %v647_v37 = vadd.f32 1e-06, %v631_v34 }
 0x1cd   : > { %v606_v39 = vpop.xlane.xlu1 %605  ;;  %v608_v40 = vpop.xlane.xlu0 %607 }
 0x1ce   : > { %1340 = vrsqrt.f32 %v646_v36  ;;  %v632_v41 = vmul.f32 0.0078125, %v606_v39  ;;  %v633_v42 = vmul.f32 0.0078125, %v608_v40  ;;  %v754_v36 = vcombine.high %v2006_v30, %v2006_v30 }
 0x1cf   : > { %1342 = vrsqrt.f32 %v647_v37  ;;  %v717_v40 = vadd.f32 1.0, %v713_v21 }
 0x1d0   : > { %v1335_v44 = vpop.eup %1334  ;;  %v648_v28 = vadd.f32 1e-06, %v632_v41  ;;  %v649_v47 = vadd.f32 1e-06, %v633_v42 }
 0x1d1   : > { %v610_v48 = vpop.xlane.xlu1 %609  ;;  %v612_v49 = vpop.xlane.xlu0 %611  ;;  %v675_v50 = vmul.f32 %v1335_v44, %v1916_v45 }
 0x1d2   : > { %1344 = vrsqrt.f32 %v648_v28  ;;  %v634_v51 = vmul.f32 0.0078125, %v610_v48  ;;  %v635_v54 = vmul.f32 0.0078125, %v612_v49 }
 0x1d3   : > { %1346 = vrsqrt.f32 %v649_v47  ;;  %v730_v55 = vmul.f32 %v2011_v43, %v675_v50 }
 0x1d4   : > { %v1337_v56 = vpop.eup %1336  ;;  %v650_v57 = vadd.f32 1e-06, %v634_v51  ;;  %v651_v58 = vadd.f32 1e-06, %v635_v54  ;;  %v768_v54 = vrot.slane %v754_v36, %v2000_v3 }
 0x1d5   : > { %v1339_v59 = vpop.eup %1338  ;;  %v614_v63 = vpop.xlane.xlu1 %613  ;;  %v676_v1 = vmul.f32 %v1337_v56, %v1924_v52  ;;  %v779_v6 = vadd.f32 %v2014_v29, %v730_v55 }
 0x1d6   : > { %v616_v0 = vpop.xlane.xlu0 %615  ;;  %1348 = vrsqrt.f32 %v650_v57  ;;  %v636_v7 = vmul.f32 0.0078125, %v614_v63  ;;  %v677_v8 = vmul.f32 %v1339_v59, %v1919_v46 }
 0x1d7   : > { %v637_v45 = vmul.f32 0.0078125, %v616_v0  ;;  %1350 = vrsqrt.f32 %v651_v58  ;;  %v731_v9 = vmul.f32 %v2011_v43, %v676_v1  ;;  %v727_v58 = vrot.slane %v717_v40, %v1998_v2 }
 0x1d8   : > { %v1341_v13 = vpop.eup %1340  ;;  %v652_v11 = vadd.f32 1e-06, %v636_v7  ;;  %v732_v20 = vmul.f32 %v2011_v43, %v677_v8 }
 0x1d9   : > { %v653_v17 = vadd.f32 1e-06, %v637_v45  ;;  %v1343_v12 = vpop.eup %1342  ;;  %v618_v22 = vpop.xlane.xlu1 %617  ;;  %v780_v23 = vadd.f32 %v2014_v29, %v731_v9  ;;  %v678_v26 = vmul.f32 %v1341_v13, %v1927_v53  ;;  %v776_v45 = vrot.slane %v768_v54, %v1998_v2 }
 0x1da   : > { %v620_v52 = vpop.xlane.xlu0 %619  ;;  %1352 = vrsqrt.f32 %v652_v11  ;;  %v638_v15 = vmul.f32 0.0078125, %v618_v22  ;;  %v781_v31 = vadd.f32 %v2014_v29, %v732_v20  ;;  %v679_v34 = vmul.f32 %v1343_v12, %v1934_v60 }
 0x1db   : > { %v639_v46 = vmul.f32 0.0078125, %v620_v52  ;;  %1354 = vrsqrt.f32 %v653_v17  ;;  %v795_v32 = vpack.c.bf16 %v780_v23, %v779_v6  ;;  %v733_v33 = vmul.f32 %v2011_v43, %v678_v26 }
 0x1dc   : > { %v1345_v35 = vpop.eup %1344  ;;  %v654_v37 = vadd.f32 1e-06, %v638_v15  ;;  %v734_v28 = vmul.f32 %v2011_v43, %v679_v34 }
 0x1dd   : > { %v655_v38 = vadd.f32 1e-06, %v639_v46  ;;  %v1347_v39 = vpop.eup %1346  ;;  %v622_v53 = vpop.xlane.xlu1 %621  ;;  %1202 = vmatprep.mubr.bf16.mxu1 %v795_v32  ;;  %v782_v42 = vadd.f32 %v2014_v29, %v733_v33  ;;  %v680_v44 = vmul.f32 %v1345_v35, %v1937_v61 }
 0x1de   : > { %v624_v41 = vpop.xlane.xlu0 %623  ;;  %1356 = vrsqrt.f32 %v654_v37  ;;  %v640_v47 = vmul.f32 0.0078125, %v622_v53  ;;  %v681_v48 = vmul.f32 %v1347_v39, %v1944_v4  ;;  %v783_v50 = vadd.f32 %v2014_v29, %v734_v28 }
 0x1df   : > { %v641_v60 = vmul.f32 0.0078125, %v624_v41  ;;  %1358 = vrsqrt.f32 %v655_v38  ;;  %v796_v30 = vpack.c.bf16 %v782_v42, %v781_v31  ;;  %v735_v49 = vmul.f32 %v2011_v43, %v680_v44 }
 0x1e0   : > { %v1349_v51 = vpop.eup %1348  ;;  %v656_v55 = vadd.f32 1e-06, %v640_v47  ;;  %v736_v61 = vmul.f32 %v2011_v43, %v681_v48 }
 0x1e1   : > { %v657_v56 = vadd.f32 1e-06, %v641_v60  ;;  %v1351_v57 = vpop.eup %1350  ;;  %v626_v59 = vpop.xlane.xlu1 %625  ;;  %1203 = vmatmul.mubr.bf16.vlgmr.msra.gmra.mrb[0].mxu1 %v796_v30  ;;  %v784_v4 = vadd.f32 %v2014_v29, %v735_v49  ;;  %v682_v62 = vmul.f32 %v1349_v51, %v1947_v5 }
 0x1e2   : > { %1360 = vrsqrt.f32 %v656_v55  ;;  %v642_v63 = vmul.f32 0.0078125, %v626_v59  ;;  %v785_v0 = vadd.f32 %v2014_v29, %v736_v61  ;;  %v683_v1 = vmul.f32 %v1351_v57, %v1954_v16 }
 0x1e3   : > { %1362 = vrsqrt.f32 %v657_v56  ;;  %v797_v3 = vpack.c.bf16 %v784_v4, %v783_v50  ;;  %v737_v6 = vmul.f32 %v2011_v43, %v682_v62 }
 0x1e4   : > { %v1353_v7 = vpop.eup %1352  ;;  %v658_v8 = vadd.f32 1e-06, %v642_v63  ;;  %v738_v9 = vmul.f32 %v727_v58, %v683_v1 }
 0x1e5   : > { %v1355_v13 = vpop.eup %1354  ;;  %1206 = vmatprep.mubr.bf16.mxu1 %v797_v3  ;;  %v786_v11 = vadd.f32 %v2014_v29, %v737_v6  ;;  %v684_v5 = vmul.f32 %v1353_v7, %v1957_v10 }
 0x1e6   : > { %1364 = vrsqrt.f32 %v658_v8  ;;  %v787_v17 = vadd.f32 %v776_v45, %v738_v9  ;;  %v685_v20 = vmul.f32 %v1355_v13, %v1964_v27 }
 0x1e7   : > { %v798_v16 = vpack.c.bf16 %v786_v11, %v785_v0  ;;  %v739_v12 = vmul.f32 %v727_v58, %v684_v5 }
 0x1e8   : > { %v1357_v21 = vpop.eup %1356  ;;  %v740_v22 = vmul.f32 %v727_v58, %v685_v20 }
 0x1e9   : > { %v1359_v43 = vpop.eup %1358  ;;  %1207 = vmatmul.mubr.bf16.gmra.mrb[4].mxu1 %v798_v16  ;;  %v788_v52 = vadd.f32 %v776_v45, %v739_v12  ;;  %v686_v2 = vmul.f32 %v1357_v21, %v1967_v14 }
 0x1ea   : > { %v789_v23 = vadd.f32 %v776_v45, %v740_v22  ;;  %v687_v26 = vmul.f32 %v1359_v43, %v1974_v18 }
 0x1eb   : > { %v799_v15 = vpack.c.bf16 %v788_v52, %v787_v17  ;;  %v741_v29 = vmul.f32 %v727_v58, %v686_v2 }
 0x1ec   : > { %v1361_v46 = vpop.eup %1360  ;;  %v742_v10 = vmul.f32 %v727_v58, %v687_v26 }
 0x1ed   : > { %v1363_v31 = vpop.eup %1362  ;;  %1210 = vmatprep.mubr.bf16.mxu1 %v799_v15  ;;  %v790_v32 = vadd.f32 %v776_v45, %v741_v29  ;;  %v688_v27 = vmul.f32 %v1361_v46, %v1977_v19  ;;  %v1151_v19 = vld [vmem:[%s2133_s5] ss:$0 sm:$0xff] }
 0x1ee   : > { %v791_v33 = vadd.f32 %v776_v45, %v742_v10  ;;  %v689_v34 = vmul.f32 %v1363_v31, %v1984_v24 }
 0x1ef   : > { %v800_v35 = vpack.c.bf16 %v790_v32, %v789_v23  ;;  %v743_v36 = vmul.f32 %v727_v58, %v688_v27 }
 0x1f0   : > { %v1365_v37 = vpop.eup %1364  ;;  %v744_v38 = vmul.f32 %v727_v58, %v689_v34 }
 0x1f1   : > { %1211 = vmatmul.mubr.bf16.gmra.mrb[8].mxu1 %v800_v35  ;;  %v792_v14 = vadd.f32 %v776_v45, %v743_v36  ;;  %v690_v18 = vmul.f32 %v1365_v37, %v1987_v25 }
 0x1f2   : > { %v793_v39 = vadd.f32 %v776_v45, %v744_v38 }
 0x1f3   : > { %v801_v40 = vpack.c.bf16 %v792_v14, %v791_v33  ;;  %v745_v53 = vmul.f32 %v727_v58, %v690_v18 }
 0x1f5   : > { %1214 = vmatprep.mubr.bf16.mxu1 %v801_v40  ;;  %v794_v41 = vadd.f32 %v776_v45, %v745_v53 }
 0x1f7   : > { %v802_v42 = vpack.c.bf16 %v794_v41, %v793_v39 }
 0x1f9   : > { %1215 = vmatmul.mubr.bf16.gmra.mrb[12].mxu1 %v802_v42 }
 0x2b4   : > { %v1204_v24 = vpop.f32.mrb[0].mxu1 }
 0x2b5   : > { %v917_v44 = vadd.f32 %v1204_v24, %v1151_v19  ;;  %v908_v28 = vpop.f32.mrb[1].mxu1 }
 0x2b6   : > { %v909_v47 = vadd.f32 %v1151_v19, %v908_v28  ;;  %v1205_v60 = vpop.f32.mrb[2].mxu1 }
 0x2b7   : > { %973 = vst [vmem:[%s2059_s26 + $0x10] sm:$0xff] %v917_v44  ;;  %v920_v25 = vadd.f32 %v1205_v60, %v1151_v19  ;;  %v911_v48 = vpop.f32.mrb[3].mxu1 }
 0x2b8   : > { %971 = vst [vmem:[%s2059_s26] sm:$0xff] %v909_v47  ;;  %v912_v30 = vadd.f32 %v1151_v19, %v911_v48 }
 0x2b9   : > { %974 = vst [vmem:[%s2059_s26 + $0x18] sm:$0xff] %v920_v25 }
 0x2ba   : > { %972 = vst [vmem:[%s2059_s26 + $0x8] sm:$0xff] %v912_v30 }
 0x2bc   : > { %v1208_v49 = vpop.f32.mrb[4].mxu1 }
 0x2bd   : > { %v933_v50 = vadd.f32 %v1208_v49, %v1151_v19  ;;  %v924_v51 = vpop.f32.mrb[5].mxu1 }
 0x2be   : > { %v925_v54 = vadd.f32 %v1151_v19, %v924_v51  ;;  %v1209_v55 = vpop.f32.mrb[6].mxu1 }
 0x2bf   : > { %977 = vst [vmem:[%s2059_s26 + $0x30] sm:$0xff] %v933_v50  ;;  %v936_v56 = vadd.f32 %v1209_v55, %v1151_v19  ;;  %v927_v61 = vpop.f32.mrb[7].mxu1 }
 0x2c0   : > { %975 = vst [vmem:[%s2059_s26 + $0x20] sm:$0xff] %v925_v54  ;;  %v928_v57 = vadd.f32 %v1151_v19, %v927_v61 }
 0x2c1   : > { %978 = vst [vmem:[%s2059_s26 + $0x38] sm:$0xff] %v936_v56 }
 0x2c2   : > { %976 = vst [vmem:[%s2059_s26 + $0x28] sm:$0xff] %v928_v57 }
 0x2c4   : > { %v1212_v58 = vpop.f32.mrb[8].mxu1 }
 0x2c5   : > { %v949_v59 = vadd.f32 %v1212_v58, %v1151_v19  ;;  %v940_v4 = vpop.f32.mrb[9].mxu1 }
 0x2c6   : > { %v941_v62 = vadd.f32 %v1151_v19, %v940_v4  ;;  %v1213_v63 = vpop.f32.mrb[10].mxu1 }
 0x2c7   : > { %981 = vst [vmem:[%s2059_s26 + $0x50] sm:$0xff] %v949_v59  ;;  %v952_v0 = vadd.f32 %v1213_v63, %v1151_v19  ;;  %v943_v1 = vpop.f32.mrb[11].mxu1 }
 0x2c8   : > { %979 = vst [vmem:[%s2059_s26 + $0x40] sm:$0xff] %v941_v62  ;;  %v944_v3 = vadd.f32 %v1151_v19, %v943_v1 }
 0x2c9   : > { %982 = vst [vmem:[%s2059_s26 + $0x58] sm:$0xff] %v952_v0 }
 0x2ca   : > { %980 = vst [vmem:[%s2059_s26 + $0x48] sm:$0xff] %v944_v3 }
 0x2cc   : > { %v1216_v6 = vpop.f32.mrb[12].mxu1 }
 0x2cd   : > { %v965_v7 = vadd.f32 %v1216_v6, %v1151_v19  ;;  %v956_v45 = vpop.f32.mrb[13].mxu1 }
 0x2ce   : > { %v957_v8 = vadd.f32 %v1151_v19, %v956_v45  ;;  %v1217_v9 = vpop.f32.mrb[14].mxu1 }
 0x2cf   : > { %985 = vst [vmem:[%s2059_s26 + $0x70] sm:$0xff] %v965_v7  ;;  %v968_v13 = vadd.f32 %v1217_v9, %v1151_v19  ;;  %v959_v11 = vpop.f32.mrb[15].mxu1 }
 0x2d0   : > { %983 = vst [vmem:[%s2059_s26 + $0x60] sm:$0xff] %v957_v8  ;;  %v960_v5 = vadd.f32 %v1151_v19, %v959_v11 }
 0x2d1   : > { %986 = vst [vmem:[%s2059_s26 + $0x78] sm:$0xff] %v968_v13 }
 0x2d2   : > { %984 = vst [vmem:[%s2059_s26 + $0x68] sm:$0xff] %v960_v5 }
 0x2d3   : > { %1495 = shalt.err (!%p1492_p5)
}
 0x2d4   : > { %s1496_s0 = scalar_lea.hbm %s2079_s7, 2048  ;;  %s1500_s30 = scalar_lea.hbm %s2134_s6, 4096 }
 0x2d5   : > { %p1497_p2 = scmp.ne.s32.totalorder %s2079_s7, %s1496_s0  ;;  %p1501_p0 = scmp.lt.u32.totalorder %s2079_s7, %s2134_s6 }
 0x2d6   : > { %p1502_p9 = scmp.lt.u32.totalorder %s1500_s30, %s1496_s0  ;;  %p1504_p1 = scmp.lt.u32.totalorder %s1496_s0, %s2079_s7 }
 0x2d7   : > { %p1498_p8 = pnand %p1497_p2, %p2164_p13 }
 0x2d8   : > { %p1503_p12 = por %p1502_p9, %p1501_p0 }
 0x2d9   : > { %p1499_p11 = pneg %p1498_p8 }
 0x2da   : > { %p1505_p6 = por %p1504_p1, %p1503_p12 }
 0x2dc   : > { %p1506_p10 = pnand %p1505_p6, %p1499_p11 }
 0x2de   : > { %1509 = shalt.err (!%p1506_p10)
}
 0x2df   : > { %s1573_s19 = smov 128   ;;  %s1574_s17 = smov 8  }
 0x2e0   : > { %1230 = dma.vmem_to_hbm [thread:$0]  (%p2164_p13), %s2081_s16, 2048, %s2079_s7, %s988_s25, %s1573_s19, %s1573_s19, %s1574_s17  }
 0x2e1 PF: > { %s1017_s26 = sand.u32 1, %s1548_s21   ;;  %p2165_p4 = scmp.ne.s32.totalorder %s2145_s28, 0 }
 0x2e2   : > { %p2166_p7 = scmp.ge.s32.totalorder %s1560_s24, 2  ;;  %s1018_s8 = scalar_lea.sflag [#allocation4], %s1017_s26 }
 0x2e4   : > { %p1247_p3 = pnand %p2166_p7, %p2165_p4 }
 0x2e6   : > { %1543 = dma.done.wait (!%p1247_p3), %s1018_s8, 2048  }
 0x2e7   : > { %1545 = vsyncadd (!%p1247_p3), %s1018_s8, 4294965248  ;;  %s2167_s2 = sld [smem:[#allocation16_spill]]  ;;  %p23_p5 = scmp.ge.s32.totalorder %s1723_s9, 4  }
 0x2e8   : > { %s2168_s21 = smov %s1552_s22  ;;  %s2169_s22 = smov %s1556_s23 }
 0x2e9   : > { %s2171_s24 = smov %s1723_s9  ;;  %25 = sbr.rel (!%p23_p5) target bundleno = 12 (0xc), region = 110 }
 0x2ed   : > { %s2170_s23 = smov %s2167_s2 }
 0x2f0   :  { %1023 = vsyncpa [#allocation3], 1 }
 0x2f1   :  { %1025 = vsyncpa [#allocation3 + $0x1], 1 }
 0x2f2   :  { %1026 = vsyncpa [#allocation6], 1 }
 0x2f3   :  { %1028 = vsyncpa [#allocation6 + $0x1], 1 }
 0x2f4   :  { %1029 = vsyncpa [#allocation9], 1 }
 0x2f5   :  { %1030 = vsyncpa [#allocation4], 1 }
 0x2f6   :  { %1032 = vsyncpa [#allocation4 + $0x1], 1 }

</bundles_post_ra>
